<compile_context>
chip_gen: v6e
topology: v6e:2x2x1
jax: 0.10.0
libtpu: 0.0.40
codegen_flags: <defaults>
</compile_context>

<pallas_src>
import math

import jax
import jax.numpy as jnp
from jax.experimental import pallas as pl
from jax.experimental.pallas import tpu as pltpu


def _round_up(x, m):
    return ((x + m - 1) // m) * m


def pose_to_scalar_kernel(
    pose_ref,    # (2, tb)        pose, batch on lanes
    scene_ref,   # (d, tb)        scene embedding, batch on lanes
    fBt_ref,     # (f, 2)         Fourier matrix, transposed
    projT_ref,   # (2, d, f)      [0] = cos-half of proj W, [1] = sin-half   (out, in)
    wT_ref,      # (2L+2, d, d)   [0]=comb emb-half, [1]=comb scene-half,
                 #                [2..L+1]=linears[0], [L+2..2L+1]=linears[1] (out, in)
    vecs_ref,    # (d, 2L+4)      cols: proj_b, comb_b, b1_0..b1_{L-1},
                 #                b2_0..b2_{L-1}, out_w, out_b (row 0)
    o_ref,       # (1, tb)        lane-dense output row
):
    f32 = jnp.float32
    L = (wT_ref.shape[0] - 2) // 2

    pose = pose_ref[...]                                   # (2, tb)
    scene = scene_ref[...]                                 # (d, tb)
    fBt = fBt_ref[...]                                     # (f, 2)

    # Fourier features: K=2 "matmul" as two VPU FMAs (no MXU push/drain).
    t = fBt[:, 0:1] * pose[0:1, :] + fBt[:, 1:2] * pose[1:2, :]   # (f, tb)
    cos_t = jnp.cos(t)
    sin_t = jnp.sin(t)

    # Embedding projection: two accumulating dots instead of a lane concat.
    emb = (
        jnp.dot(projT_ref[0], cos_t, preferred_element_type=f32)
        + jnp.dot(projT_ref[1], sin_t, preferred_element_type=f32)
        + vecs_ref[:, 0:1]
    )                                                             # (d, tb)

    # Combiner over cat([emb, scene]): two accumulating dots.
    z = (
        jnp.dot(wT_ref[0], emb, preferred_element_type=f32)
        + jnp.dot(wT_ref[1], scene, preferred_element_type=f32)
        + vecs_ref[:, 1:2]
    )                                                             # (d, tb)

    # Residual blocks (in_d == out_d -> identity skip). L is small -> static unroll.
    for i in range(L):
        b1 = vecs_ref[:, 2 + i : 3 + i]                           # (d, 1)
        b2 = vecs_ref[:, 2 + L + i : 3 + L + i]                   # (d, 1)
        h = jnp.maximum(
            jnp.dot(wT_ref[2 + i], z, preferred_element_type=f32) + b1, 0.0
        )
        h = jnp.maximum(
            jnp.dot(wT_ref[2 + L + i], h, preferred_element_type=f32) + b2, 0.0
        )
        z = h + z

    # Output head (out_d=1): VPU multiply + sublane reduction -> lane-dense row.
    out_w = vecs_ref[:, 2 + 2 * L : 3 + 2 * L]                    # (d, 1)
    out_b = vecs_ref[0:1, 3 + 2 * L : 4 + 2 * L]                  # (1, 1)
    o_ref[...] = jnp.sum(z * out_w, axis=0, keepdims=True) + out_b


def _pose_to_scalar_t(pose_t, scene_t, params, *, tile_b=2048):
    """Batch-on-lanes entry point: pose_t (2, B), scene_t (d, B) -> (1, B)."""
    d, B = scene_t.shape
    f = params["fourier_Bt"].shape[0]
    nw = params["wT"].shape[0]
    nv = params["vecs_t"].shape[1]

    # Batch tile lives on the lane axis: it must be a multiple of 128 lanes
    # unless it covers the whole batch.  Prefer >=2 grid steps when B allows it
    # so the "parallel" axis actually shards across v7x's two TensorCores.
    tb = min(tile_b, _round_up(B, 128))
    if B > 128:
        tb = min(tb, _round_up(pl.cdiv(B, 2), 128))
    if tb >= B:
        tb = B  # single full-extent tile (block == array dim satisfies layout rules)
    grid = pl.cdiv(B, tb)  # ragged last block handled by Pallas (no wrapper pad)

    out = pl.pallas_call(
        pose_to_scalar_kernel,
        out_shape=jax.ShapeDtypeStruct((1, B), jnp.float32),
        grid_spec=pltpu.PrefetchScalarGridSpec(
            num_scalar_prefetch=0,
            grid=(grid,),
            in_specs=[
                # batch-tiled activations (batch on lanes)
                pl.BlockSpec((2, tb), lambda i: (0, i)),
                pl.BlockSpec((d, tb), lambda i: (0, i)),
                # weights: constant index_map -> VMEM-resident across grid steps
                pl.BlockSpec((f, 2), lambda i: (0, 0)),
                pl.BlockSpec((2, d, f), lambda i: (0, 0, 0)),
                pl.BlockSpec((nw, d, d), lambda i: (0, 0, 0)),
                pl.BlockSpec((d, nv), lambda i: (0, 0)),
            ],
            out_specs=pl.BlockSpec((1, tb), lambda i: (0, i)),
        ),
        compiler_params=pltpu.CompilerParams(
            dimension_semantics=("parallel",),
        ),
    )(
        pose_t,
        scene_t,
        params["fourier_Bt"],
        params["proj_wT"],
        params["wT"],
        params["vecs_t"],
    )
    return out  # (1, B)


def pose_to_scalar(pose, scene, params, *, tile_b=2048):
    """PyTorch-layout wrapper: pose (B, 2), scene (B, d) -> (B, 1).

    The transposes here are pure layout plumbing; producers that can emit
    scene as (d, B) should call _pose_to_scalar_t directly and skip the extra
    HBM pass over scene.
    """
    out = _pose_to_scalar_t(pose.T, scene.T, params, tile_b=tile_b)
    return out.reshape(-1, 1)


def pose_to_scalar_ref(pose, scene, params):
    """Pure-JAX reference mirroring the PyTorch forward exactly (row-batch)."""
    wT = params["wT"]
    L = (wT.shape[0] - 2) // 2
    vecs = params["vecs_t"]                      # (d, 2L+4)
    fB = params["fourier_Bt"].T                  # (2, f)
    projT = params["proj_wT"]                    # (2, d, f)

    t = pose @ fB
    feats = jnp.concatenate([jnp.cos(t), jnp.sin(t)], axis=1)          # (B, 2f)
    proj_w = jnp.concatenate([projT[0], projT[1]], axis=1)             # (d, 2f)
    emb = feats @ proj_w.T + vecs[:, 0]
    z = emb @ wT[0].T + scene @ wT[1].T + vecs[:, 1]
    for i in range(L):
        h = jax.nn.relu(z @ wT[2 + i].T + vecs[:, 2 + i])
        h = jax.nn.relu(h @ wT[2 + L + i].T + vecs[:, 2 + L + i])
        z = h + z
    out_w = vecs[:, 2 + 2 * L]                   # (d,)
    out_b = vecs[0, 3 + 2 * L]                   # scalar
    return z @ out_w[:, None] + out_b


def make_params(key, d, fourier_dim, num_layers, alpha=1.0):
    """Build packed, pre-transposed parameters (torch (out, in) weight layout)."""
    ks = jax.random.split(key, 12)
    scale = 0.1
    f = fourier_dim
    fourier_B = (
        2.0 * math.pi * alpha * jax.random.normal(ks[0], (2, f), jnp.float32)
    )
    proj_w = scale * jax.random.normal(ks[1], (d, 2 * f), jnp.float32)   # (out, in)
    proj_b = scale * jax.random.normal(ks[2], (d,), jnp.float32)
    comb_w = scale * jax.random.normal(ks[3], (d, 2 * d), jnp.float32)   # (out, in)
    comb_b = scale * jax.random.normal(ks[4], (d,), jnp.float32)
    w1 = scale * jax.random.normal(ks[5], (num_layers, d, d), jnp.float32)
    b1 = scale * jax.random.normal(ks[6], (num_layers, d), jnp.float32)
    w2 = scale * jax.random.normal(ks[7], (num_layers, d, d), jnp.float32)
    b2 = scale * jax.random.normal(ks[8], (num_layers, d), jnp.float32)
    out_w = scale * jax.random.normal(ks[9], (d,), jnp.float32)
    out_b = scale * jax.random.normal(ks[10], (), jnp.float32)

    fourier_Bt = fourier_B.T                                             # (f, 2)
    proj_wT = jnp.stack([proj_w[:, :f], proj_w[:, f:]], axis=0)          # (2, d, f)
    wT = jnp.concatenate(
        [comb_w[:, :d][None], comb_w[:, d:][None], w1, w2], axis=0
    )                                                                    # (2L+2, d, d)
    out_b_row = jnp.zeros((d,), jnp.float32).at[0].set(out_b)
    vecs = jnp.concatenate(
        [proj_b[None], comb_b[None], b1, b2, out_w[None], out_b_row[None]],
        axis=0,
    )                                                                    # (2L+4, d)
    return {
        "fourier_Bt": fourier_Bt,
        "proj_wT": proj_wT,
        "wT": wT,
        "vecs_t": vecs.T,                                                # (d, 2L+4)
    }


if __name__ == "__main__":
    d = 32          # embedding_dim
    fdim = 16       # fourier_embedding_dim
    num_layers = 2  # num_layers

    key = jax.random.PRNGKey(0)
    kp, k_pose, k_scene = jax.random.split(key, 3)
    params = make_params(kp, d, fdim, num_layers, alpha=1.0)

    # Small check (single full-extent tile, grid=(1,)).
    B = 8
    pose = jax.random.normal(k_pose, (B, 2), jnp.float32)
    scene = jax.random.normal(k_scene, (B, d), jnp.float32)
    out = jax.block_until_ready(pose_to_scalar(pose, scene, params))
    ref = pose_to_scalar_ref(pose, scene, params)
    assert out.shape == (B, 1)
    assert jnp.allclose(out, ref, atol=1e-4, rtol=1e-4), (out, ref)

    # Multi-step grid + ragged trailing block (B=200, tb=128 -> 2 steps, no pad).
    B2 = 200
    pose2 = jax.random.normal(jax.random.PRNGKey(7), (B2, 2), jnp.float32)
    scene2 = jax.random.normal(jax.random.PRNGKey(8), (B2, d), jnp.float32)
    out2 = jax.block_until_ready(pose_to_scalar(pose2, scene2, params))
    ref2 = pose_to_scalar_ref(pose2, scene2, params)
    assert out2.shape == (B2, 1)
    assert jnp.allclose(out2, ref2, atol=1e-4, rtol=1e-4), (out2, ref2)

    print("KERNEL_OK")
</pallas_src>

<mosaic_0001>
module attributes {stable_mosaic.version = 11 : i64} {
  func.func @pose_to_scalar_kernel(%arg0: i32, %arg1: memref<2x8xf32, #tpu.memory_space<vmem>>, %arg2: memref<32x8xf32, #tpu.memory_space<vmem>>, %arg3: memref<16x2xf32, #tpu.memory_space<vmem>>, %arg4: memref<2x32x16xf32, #tpu.memory_space<vmem>>, %arg5: memref<6x32x32xf32, #tpu.memory_space<vmem>>, %arg6: memref<32x8xf32, #tpu.memory_space<vmem>>, %arg7: memref<1x8xf32, #tpu.memory_space<vmem>>) attributes {dimension_semantics = [#tpu.dimension_semantics<parallel>], iteration_bounds = array<i64: 1>, scalar_prefetch = 0 : i64, scratch_operands = 0 : i64, tpu.core_type = #tpu.core_type<tc>, window_params = [{transform_indices = @transform_0, window_bounds = array<i64: 2, 8>}, {transform_indices = @transform_1, window_bounds = array<i64: 32, 8>}, {pipeline_mode = #tpu.pipeline_mode<synchronous>, transform_indices = @transform_2, window_bounds = array<i64: 16, 2>}, {pipeline_mode = #tpu.pipeline_mode<synchronous>, transform_indices = @transform_3, window_bounds = array<i64: 2, 32, 16>}, {pipeline_mode = #tpu.pipeline_mode<synchronous>, transform_indices = @transform_4, window_bounds = array<i64: 6, 32, 32>}, {pipeline_mode = #tpu.pipeline_mode<synchronous>, transform_indices = @transform_5, window_bounds = array<i64: 32, 8>}, {transform_indices = @transform_6, window_bounds = array<i64: 1, 8>}]} {
    %c0 = arith.constant 0 : index
    %c0_0 = arith.constant 0 : index
    %0 = vector.load %arg1[%c0, %c0_0] : memref<2x8xf32, #tpu.memory_space<vmem>>, vector<2x8xf32>
    %c0_1 = arith.constant 0 : index
    %c0_2 = arith.constant 0 : index
    %1 = vector.load %arg2[%c0_1, %c0_2] : memref<32x8xf32, #tpu.memory_space<vmem>>, vector<32x8xf32>
    %c0_3 = arith.constant 0 : index
    %c0_4 = arith.constant 0 : index
    %2 = vector.load %arg3[%c0_3, %c0_4] : memref<16x2xf32, #tpu.memory_space<vmem>>, vector<16x2xf32>
    %3 = vector.extract_strided_slice %2 {offsets = [0, 0], sizes = [16, 1], strides = [1, 1]} : vector<16x2xf32> to vector<16x1xf32>
    %4 = vector.extract_strided_slice %0 {offsets = [0, 0], sizes = [1, 8], strides = [1, 1]} : vector<2x8xf32> to vector<1x8xf32>
    %5 = vector.broadcast %3 : vector<16x1xf32> to vector<16x8xf32>
    %6 = vector.broadcast %4 : vector<1x8xf32> to vector<16x8xf32>
    %7 = arith.mulf %5, %6 : vector<16x8xf32>
    %8 = vector.extract_strided_slice %2 {offsets = [0, 1], sizes = [16, 1], strides = [1, 1]} : vector<16x2xf32> to vector<16x1xf32>
    %9 = vector.extract_strided_slice %0 {offsets = [1, 0], sizes = [1, 8], strides = [1, 1]} : vector<2x8xf32> to vector<1x8xf32>
    %10 = vector.broadcast %8 : vector<16x1xf32> to vector<16x8xf32>
    %11 = vector.broadcast %9 : vector<1x8xf32> to vector<16x8xf32>
    %12 = arith.mulf %10, %11 : vector<16x8xf32>
    %13 = arith.addf %7, %12 : vector<16x8xf32>
    %14 = math.cos %13 : vector<16x8xf32>
    %15 = math.sin %13 : vector<16x8xf32>
    %c0_5 = arith.constant 0 : index
    %c0_6 = arith.constant 0 : index
    %c0_7 = arith.constant 0 : index
    %16 = vector.load %arg4[%c0_5, %c0_6, %c0_7] : memref<2x32x16xf32, #tpu.memory_space<vmem>>, vector<1x32x16xf32>
    %17 = vector.shape_cast %16 : vector<1x32x16xf32> to vector<32x16xf32>
    %cst = arith.constant dense<0.000000e+00> : vector<32x8xf32>
    %18 = tpu.matmul %17, %14, %cst {dimension_numbers = #tpu.dot_dimension_numbers<[1], [0], [0], [1], [0, 0, 1, 1], [], []>} : vector<32x16xf32>, vector<16x8xf32>, vector<32x8xf32> -> vector<32x8xf32>
    %c1 = arith.constant 1 : index
    %c0_8 = arith.constant 0 : index
    %c0_9 = arith.constant 0 : index
    %19 = vector.load %arg4[%c1, %c0_8, %c0_9] : memref<2x32x16xf32, #tpu.memory_space<vmem>>, vector<1x32x16xf32>
    %20 = vector.shape_cast %19 : vector<1x32x16xf32> to vector<32x16xf32>
    %cst_10 = arith.constant dense<0.000000e+00> : vector<32x8xf32>
    %21 = tpu.matmul %20, %15, %cst_10 {dimension_numbers = #tpu.dot_dimension_numbers<[1], [0], [0], [1], [0, 0, 1, 1], [], []>} : vector<32x16xf32>, vector<16x8xf32>, vector<32x8xf32> -> vector<32x8xf32>
    %22 = arith.addf %18, %21 : vector<32x8xf32>
    %c0_11 = arith.constant 0 : index
    %c0_12 = arith.constant 0 : index
    %23 = vector.load %arg6[%c0_11, %c0_12] : memref<32x8xf32, #tpu.memory_space<vmem>>, vector<32x1xf32>
    %24 = vector.broadcast %23 : vector<32x1xf32> to vector<32x8xf32>
    %25 = arith.addf %22, %24 : vector<32x8xf32>
    %c0_13 = arith.constant 0 : index
    %c0_14 = arith.constant 0 : index
    %c0_15 = arith.constant 0 : index
    %26 = vector.load %arg5[%c0_13, %c0_14, %c0_15] : memref<6x32x32xf32, #tpu.memory_space<vmem>>, vector<1x32x32xf32>
    %27 = vector.shape_cast %26 : vector<1x32x32xf32> to vector<32x32xf32>
    %cst_16 = arith.constant dense<0.000000e+00> : vector<32x8xf32>
    %28 = tpu.matmul %27, %25, %cst_16 {dimension_numbers = #tpu.dot_dimension_numbers<[1], [0], [0], [1], [0, 0, 1, 1], [], []>} : vector<32x32xf32>, vector<32x8xf32>, vector<32x8xf32> -> vector<32x8xf32>
    %c1_17 = arith.constant 1 : index
    %c0_18 = arith.constant 0 : index
    %c0_19 = arith.constant 0 : index
    %29 = vector.load %arg5[%c1_17, %c0_18, %c0_19] : memref<6x32x32xf32, #tpu.memory_space<vmem>>, vector<1x32x32xf32>
    %30 = vector.shape_cast %29 : vector<1x32x32xf32> to vector<32x32xf32>
    %cst_20 = arith.constant dense<0.000000e+00> : vector<32x8xf32>
    %31 = tpu.matmul %30, %1, %cst_20 {dimension_numbers = #tpu.dot_dimension_numbers<[1], [0], [0], [1], [0, 0, 1, 1], [], []>} : vector<32x32xf32>, vector<32x8xf32>, vector<32x8xf32> -> vector<32x8xf32>
    %32 = arith.addf %28, %31 : vector<32x8xf32>
    %c0_21 = arith.constant 0 : index
    %c1_22 = arith.constant 1 : index
    %33 = vector.load %arg6[%c0_21, %c1_22] : memref<32x8xf32, #tpu.memory_space<vmem>>, vector<32x1xf32>
    %34 = vector.broadcast %33 : vector<32x1xf32> to vector<32x8xf32>
    %35 = arith.addf %32, %34 : vector<32x8xf32>
    %c0_23 = arith.constant 0 : index
    %c2 = arith.constant 2 : index
    %36 = vector.load %arg6[%c0_23, %c2] : memref<32x8xf32, #tpu.memory_space<vmem>>, vector<32x1xf32>
    %c0_24 = arith.constant 0 : index
    %c4 = arith.constant 4 : index
    %37 = vector.load %arg6[%c0_24, %c4] : memref<32x8xf32, #tpu.memory_space<vmem>>, vector<32x1xf32>
    %c2_25 = arith.constant 2 : index
    %c0_26 = arith.constant 0 : index
    %c0_27 = arith.constant 0 : index
    %38 = vector.load %arg5[%c2_25, %c0_26, %c0_27] : memref<6x32x32xf32, #tpu.memory_space<vmem>>, vector<1x32x32xf32>
    %39 = vector.shape_cast %38 : vector<1x32x32xf32> to vector<32x32xf32>
    %cst_28 = arith.constant dense<0.000000e+00> : vector<32x8xf32>
    %40 = tpu.matmul %39, %35, %cst_28 {dimension_numbers = #tpu.dot_dimension_numbers<[1], [0], [0], [1], [0, 0, 1, 1], [], []>} : vector<32x32xf32>, vector<32x8xf32>, vector<32x8xf32> -> vector<32x8xf32>
    %41 = vector.broadcast %36 : vector<32x1xf32> to vector<32x8xf32>
    %42 = arith.addf %40, %41 : vector<32x8xf32>
    %cst_29 = arith.constant 0.000000e+00 : f32
    %43 = vector.broadcast %cst_29 : f32 to vector<32x8xf32>
    %44 = arith.maximumf %42, %43 : vector<32x8xf32>
    %c4_30 = arith.constant 4 : index
    %c0_31 = arith.constant 0 : index
    %c0_32 = arith.constant 0 : index
    %45 = vector.load %arg5[%c4_30, %c0_31, %c0_32] : memref<6x32x32xf32, #tpu.memory_space<vmem>>, vector<1x32x32xf32>
    %46 = vector.shape_cast %45 : vector<1x32x32xf32> to vector<32x32xf32>
    %cst_33 = arith.constant dense<0.000000e+00> : vector<32x8xf32>
    %47 = tpu.matmul %46, %44, %cst_33 {dimension_numbers = #tpu.dot_dimension_numbers<[1], [0], [0], [1], [0, 0, 1, 1], [], []>} : vector<32x32xf32>, vector<32x8xf32>, vector<32x8xf32> -> vector<32x8xf32>
    %48 = vector.broadcast %37 : vector<32x1xf32> to vector<32x8xf32>
    %49 = arith.addf %47, %48 : vector<32x8xf32>
    %cst_34 = arith.constant 0.000000e+00 : f32
    %50 = vector.broadcast %cst_34 : f32 to vector<32x8xf32>
    %51 = arith.maximumf %49, %50 : vector<32x8xf32>
    %52 = arith.addf %51, %35 : vector<32x8xf32>
    %c0_35 = arith.constant 0 : index
    %c3 = arith.constant 3 : index
    %53 = vector.load %arg6[%c0_35, %c3] : memref<32x8xf32, #tpu.memory_space<vmem>>, vector<32x1xf32>
    %c0_36 = arith.constant 0 : index
    %c5 = arith.constant 5 : index
    %54 = vector.load %arg6[%c0_36, %c5] : memref<32x8xf32, #tpu.memory_space<vmem>>, vector<32x1xf32>
    %c3_37 = arith.constant 3 : index
    %c0_38 = arith.constant 0 : index
    %c0_39 = arith.constant 0 : index
    %55 = vector.load %arg5[%c3_37, %c0_38, %c0_39] : memref<6x32x32xf32, #tpu.memory_space<vmem>>, vector<1x32x32xf32>
    %56 = vector.shape_cast %55 : vector<1x32x32xf32> to vector<32x32xf32>
    %cst_40 = arith.constant dense<0.000000e+00> : vector<32x8xf32>
    %57 = tpu.matmul %56, %52, %cst_40 {dimension_numbers = #tpu.dot_dimension_numbers<[1], [0], [0], [1], [0, 0, 1, 1], [], []>} : vector<32x32xf32>, vector<32x8xf32>, vector<32x8xf32> -> vector<32x8xf32>
    %58 = vector.broadcast %53 : vector<32x1xf32> to vector<32x8xf32>
    %59 = arith.addf %57, %58 : vector<32x8xf32>
    %cst_41 = arith.constant 0.000000e+00 : f32
    %60 = vector.broadcast %cst_41 : f32 to vector<32x8xf32>
    %61 = arith.maximumf %59, %60 : vector<32x8xf32>
    %c5_42 = arith.constant 5 : index
    %c0_43 = arith.constant 0 : index
    %c0_44 = arith.constant 0 : index
    %62 = vector.load %arg5[%c5_42, %c0_43, %c0_44] : memref<6x32x32xf32, #tpu.memory_space<vmem>>, vector<1x32x32xf32>
    %63 = vector.shape_cast %62 : vector<1x32x32xf32> to vector<32x32xf32>
    %cst_45 = arith.constant dense<0.000000e+00> : vector<32x8xf32>
    %64 = tpu.matmul %63, %61, %cst_45 {dimension_numbers = #tpu.dot_dimension_numbers<[1], [0], [0], [1], [0, 0, 1, 1], [], []>} : vector<32x32xf32>, vector<32x8xf32>, vector<32x8xf32> -> vector<32x8xf32>
    %65 = vector.broadcast %54 : vector<32x1xf32> to vector<32x8xf32>
    %66 = arith.addf %64, %65 : vector<32x8xf32>
    %cst_46 = arith.constant 0.000000e+00 : f32
    %67 = vector.broadcast %cst_46 : f32 to vector<32x8xf32>
    %68 = arith.maximumf %66, %67 : vector<32x8xf32>
    %69 = arith.addf %68, %52 : vector<32x8xf32>
    %c0_47 = arith.constant 0 : index
    %c6 = arith.constant 6 : index
    %70 = vector.load %arg6[%c0_47, %c6] : memref<32x8xf32, #tpu.memory_space<vmem>>, vector<32x1xf32>
    %c0_48 = arith.constant 0 : index
    %c7 = arith.constant 7 : index
    %71 = vector.load %arg6[%c0_48, %c7] : memref<32x8xf32, #tpu.memory_space<vmem>>, vector<1x1xf32>
    %72 = vector.broadcast %70 : vector<32x1xf32> to vector<32x8xf32>
    %73 = arith.mulf %69, %72 : vector<32x8xf32>
    %cst_49 = arith.constant dense<0.000000e+00> : vector<8xf32>
    %74 = vector.multi_reduction <add>, %73, %cst_49 [0] : vector<32x8xf32> to vector<8xf32>
    %75 = vector.shape_cast %74 : vector<8xf32> to vector<1x8xf32>
    %76 = vector.broadcast %71 : vector<1x1xf32> to vector<1x8xf32>
    %77 = arith.addf %75, %76 : vector<1x8xf32>
    %c0_50 = arith.constant 0 : index
    %c0_51 = arith.constant 0 : index
    %78 = vector.load %arg7[%c0_50, %c0_51] : memref<1x8xf32, #tpu.memory_space<vmem>>, vector<1x8xf32>
    tpu.vector_store %arg7[%c0_50, %c0_51], %77 {strides = array<i32>} : memref<1x8xf32, #tpu.memory_space<vmem>>, vector<1x8xf32>,
    return
  }
  func.func @transform_0(%arg0: i32) -> (i32, i32) {
    %c0_i32 = arith.constant 0 : i32
    %c0_i32_0 = arith.constant 0 : i32
    return %c0_i32, %arg0 : i32, i32
  }
  func.func @transform_1(%arg0: i32) -> (i32, i32) {
    %c0_i32 = arith.constant 0 : i32
    %c0_i32_0 = arith.constant 0 : i32
    return %c0_i32, %arg0 : i32, i32
  }
  func.func @transform_2(%arg0: i32) -> (i32, i32) {
    %c0_i32 = arith.constant 0 : i32
    %c0_i32_0 = arith.constant 0 : i32
    %c0_i32_1 = arith.constant 0 : i32
    return %c0_i32, %c0_i32_0 : i32, i32
  }
  func.func @transform_3(%arg0: i32) -> (i32, i32, i32) {
    %c0_i32 = arith.constant 0 : i32
    %c0_i32_0 = arith.constant 0 : i32
    %c0_i32_1 = arith.constant 0 : i32
    %c0_i32_2 = arith.constant 0 : i32
    return %c0_i32, %c0_i32_0, %c0_i32_1 : i32, i32, i32
  }
  func.func @transform_4(%arg0: i32) -> (i32, i32, i32) {
    %c0_i32 = arith.constant 0 : i32
    %c0_i32_0 = arith.constant 0 : i32
    %c0_i32_1 = arith.constant 0 : i32
    %c0_i32_2 = arith.constant 0 : i32
    return %c0_i32, %c0_i32_0, %c0_i32_1 : i32, i32, i32
  }
  func.func @transform_5(%arg0: i32) -> (i32, i32) {
    %c0_i32 = arith.constant 0 : i32
    %c0_i32_0 = arith.constant 0 : i32
    %c0_i32_1 = arith.constant 0 : i32
    return %c0_i32, %c0_i32_0 : i32, i32
  }
  func.func @transform_6(%arg0: i32) -> (i32, i32) {
    %c0_i32 = arith.constant 0 : i32
    %c0_i32_0 = arith.constant 0 : i32
    return %c0_i32, %arg0 : i32, i32
  }
}

</mosaic_0001>

<bundles_post_ra>
// kernel: tpu_custom_call.1
= control target key start
LH: loop header
LB: loop body
LE: loop exit
PB: predicated region body
PF: predicated region fallthrough
CT: control target
= control target key end

     0   :  { %v1794_v2 = vmov 0   ;;  %s2157_s0 = inlined_call_operand.vmem [shape: f32[2,8], index: 0, kind: input, shape index: {}]   ;;  %s2158_s1 = inlined_call_operand.vmem [shape: f32[32,8], index: 1, kind: input, shape index: {}]   ;;  %s2159_s2 = inlined_call_operand.vmem [shape: f32[16,2], index: 2, kind: input, shape index: {}]   ;;  %s2160_s3 = inlined_call_operand.vmem [shape: f32[2,32,16], index: 3, kind: input, shape index: {}]   ;;  %s2161_s4 = inlined_call_operand.vmem [shape: f32[6,32,32], index: 4, kind: input, shape index: {}]   ;;  %s2162_s5 = inlined_call_operand.vmem [shape: f32[32,8], index: 5, kind: input, shape index: {}]   ;;  %s2163_s6 = inlined_call_operand.hbm [shape: f32[1,8], index: 6, kind: output, shape index: {}]  }
   0x1   :  { %v30_v0 = vld [vmem:[%s2159_s2 + $0x8] sm:$0xff]  ;;  %v29_v1 = vld [vmem:[%s2159_s2] sm:$0xff]  ;;  %1747 = vset.pattern.permute.xlu1 %v1794_v2  ;;  %1745 = vset.pattern.permute.xlu0 %v1794_v2 }
   0x2   :  { %11 = vsyncpa [#allocation3], 0  ;;  %38 = vperm.xlu0 %1745, %v30_v0   ;;  %33 = vperm.xlu1 %1747, %v29_v1   ;;  %v1795_v3 = vmov 1   ;;  %v1502_v4 = vld [vmem:[%s2160_s3 + $0x20] sm:$0xff]  ;;  %vm486_vm0 = vcmask 130048   ;;  %v1861_v6 = vld [vmem:[%s2162_s5 + $0x18] sm:$0xff]  ;;  %v41_v10 = vlaneseq }
   0x3   :  { %v477_v5 = vld [vmem:[%s2160_s3] sm:$0xff]  ;;  %1622 = vmatprep.mubr.msk.f32.mxu0 %vm486_vm0, %v1502_v4  ;;  %v1867_v7 = vld [vmem:[%s2162_s5 + $0x10] sm:$0xff]  ;;  %v1872_v8 = vld [vmem:[%s2162_s5 + $0x8] sm:$0xff]  ;;  %v1796_v51 = vmov 2102212464  }
   0x4   :  { %1632 = vmatprep.mubr.msk.f32.mxu1 %vm486_vm0, %v477_v5  ;;  %v1879_v9 = vld [vmem:[%s2162_s5] sm:$0xff]  ;;  %v42_v11 = vshrl.u32 %v41_v10, 7  ;;  %v1797_v53 = vmov 683565275   ;;  %v1798_v55 = vmov 2475754826  }
   0x5   :  { %v24_v14 = vld [vmem:[%s2157_s0] sm:$0x3]  ;;  %v1799_v57 = vmov 920167782   ;;  %v1800_v59 = vmov 1326507024  }
   0x6   :  { %1746 = vset.pattern.permute.xlu0 %v1795_v3  ;;  %1748 = vset.pattern.permute.xlu1 %v1795_v3  ;;  %v43_v12 = vsub.s32 0, %v42_v11  ;;  %v57_v13 = vsub.s32 1, %v42_v11  ;;  %v1801_v62 = vmov 2131351028  }
   0x7   :  { %52 = vperm.xlu0 %1746, %v30_v0   ;;  %48 = vperm.xlu1 %1748, %v29_v1  }
   0x8   :  { %v44_v17 = vrot.slane %v24_v14, %v43_v12  ;;  %v58_v18 = vrot.slane %v24_v14, %v57_v13 }
   0xb   :  { %1749 = vset.pattern.permute.xlu1 %v1794_v2  ;;  %1750 = vset.pattern.permute.xlu0 %v1794_v2 }
   0xc   :  { %702 = vperm.xlu1 %1749, %v1861_v6   ;;  %697 = vperm.xlu0 %1750, %v1867_v7  }
  0x10   :  { %692 = vperm.xlu1 %1749, %v1872_v8   ;;  %1751 = vset.pattern.permute.xlu0 %v1795_v3 }
  0x11   :  { %926 = vperm.xlu0 %1751, %v1861_v6  }
  0x14   :  { %687 = vperm.xlu1 %1749, %v1879_v9  }
  0x15   :  { %914 = vperm.xlu0 %1751, %v1879_v9  }
  0x18   :  { %1752 = vset.pattern.permute.xlu1 %v1795_v3 }
  0x19   :  { %922 = vperm.xlu1 %1752, %v1867_v7  }
  0x1d   :  { %918 = vperm.xlu1 %1752, %v1872_v8  }
  0x7d   :  { %v39_v15 = vpop.permute.xlu0 %38  ;;  %v34_v16 = vpop.permute.xlu1 %33 }
  0x7e   :  { %v46_v21 = vmul.f32 %v44_v17, %v39_v15  ;;  %v45_v22 = vmul.f32 %v44_v17, %v34_v16 }
  0x82   :  { %v53_v19 = vpop.permute.xlu0 %52  ;;  %v49_v20 = vpop.permute.xlu1 %48 }
  0x83   :  { %v60_v23 = vmul.f32 %v58_v18, %v53_v19  ;;  %v59_v24 = vmul.f32 %v58_v18, %v49_v20 }
  0x85   :  { %v1889_v25 = vadd.f32 %v60_v23, %v46_v21  ;;  %v1891_v26 = vadd.f32 %v59_v24, %v45_v22 }
  0x87   :  { %v169_v27 = vand.u32 2139095040, %v1889_v25  ;;  %v66_v28 = vand.u32 2139095040, %v1891_v26  ;;  %v166_v29 = vand.u32 2147483647, %v1889_v25  ;;  %v63_v30 = vand.u32 2147483647, %v1891_v26 }
  0x88   :  { %vm168_vm15 = vcmp.lt.s32.totalorder %v1889_v25, 0 }
  0x89   :  { %v170_v31 = vshrl.u32 %v169_v27, 23  ;;  %v67_v32 = vshrl.u32 %v66_v28, 23  ;;  %v173_v33 = vand.u32 8388607, %v166_v29  ;;  %v70_v36 = vand.u32 8388607, %v63_v30 }
  0x8b   :  { %v1490_v34 = vadd.s32 4294967169, %v170_v31  ;;  %v1486_v35 = vadd.s32 4294967169, %v67_v32  ;;  %v174_v39 = vor.u32 8388608, %v173_v33  ;;  %v71_v40 = vor.u32 8388608, %v70_v36 }
  0x8d   :  { %v176_v37 = vadd.s32 1, %v1490_v34  ;;  %v73_v38 = vadd.s32 1, %v1486_v35  ;;  %v1901_v45 = vshll.u32 %v174_v39, 8  ;;  %v1903_v49 = vshll.u32 %v71_v40, 8 }
  0x8f   :  { %vm177_vm1 = vcmp.gt.s32.totalorder %v176_v37, 0  ;;  %vm74_vm2 = vcmp.gt.s32.totalorder %v73_v38, 0 }
  0x90   :  { %v178_v41 = vsel %vm177_vm1, %v176_v37, 0  ;;  %v75_v42 = vsel %vm74_vm2, %v73_v38, 0  ;;  %vm167_vm1 = vcmp.le.f32.partialorder %v166_v29, 0.7853982  ;;  %vm65_vm2 = vcmp.lt.s32.totalorder %v1891_v26, 0 }
  0x91   :  { %v180_v43 = vand.u32 31, %v178_v41  ;;  %v77_v44 = vand.u32 31, %v75_v42  ;;  %v179_v46 = vshrl.u32 %v178_v41, 5  ;;  %v1905_v50 = vshrl.u32 %v75_v42, 5 }
  0x93   :  { %v181_v47 = vsub.s32 32, %v180_v43  ;;  %v78_v48 = vsub.s32 32, %v77_v44  ;;  %v89_v52 = vshll.u32 %v1796_v51, %v77_v44  ;;  %v183_v54 = vshll.u32 %v1797_v53, %v180_v43 }
  0x94   :  { %v186_v56 = vshll.u32 %v1798_v55, %v180_v43  ;;  %v189_v63 = vshll.u32 %v1801_v62, %v180_v43  ;;  %v192_v2 = vshll.u32 %v1796_v51, %v180_v43  ;;  %v92_v4 = vshll.u32 %v1799_v57, %v77_v44 }
  0x95   :  { %v90_v58 = vshrl.u32 %v1799_v57, %v78_v48  ;;  %v93_v60 = vshrl.u32 %v1800_v59, %v78_v48  ;;  %v184_v61 = vshrl.u32 %v1798_v55, %v181_v47  ;;  %v187_v0 = vshrl.u32 %v1801_v62, %v181_v47 }
  0x96   :  { %v190_v1 = vshrl.u32 %v1796_v51, %v181_v47  ;;  %v193_v3 = vshrl.u32 %v1799_v57, %v181_v47  ;;  %v182_v5 = vshrl.u32 %v1797_v53, %v181_v47  ;;  %v195_v11 = vshll.u32 %v1799_v57, %v180_v43 }
  0x97   :  { %v185_v10 = vor.u32 %v184_v61, %v183_v54  ;;  %v188_v12 = vor.u32 %v187_v0, %v186_v56  ;;  %v196_v15 = vshrl.u32 %v1800_v59, %v181_v47  ;;  %v91_v16 = vor.u32 %v90_v58, %v89_v52 }
  0x98   :  { %v191_v13 = vor.u32 %v190_v1, %v189_v63  ;;  %v194_v14 = vor.u32 %v193_v3, %v192_v2  ;;  %v94_v17 = vor.u32 %v93_v60, %v92_v4  ;;  %vm98_vm3 = vcmp.lt.s32.totalorder %v1905_v50, 4 }
  0x99   :  { %vm198_vm4 = vcmp.lt.s32.totalorder %v179_v46, 1  ;;  %v197_v18 = vor.u32 %v196_v15, %v195_v11  ;;  %vm200_vm5 = vcmp.lt.s32.totalorder %v179_v46, 3  ;;  %vm201_vm6 = vcmp.lt.s32.totalorder %v179_v46, 4 }
  0x9a   :  { %v202_v19 = vsel %vm198_vm4, %v182_v5, %v185_v10  ;;  %v203_v20 = vsel %vm201_vm6, %v191_v13, 2102212464  ;;  %v206_v21 = vsel %vm198_vm4, %v185_v10, %v188_v12  ;;  %v207_v22 = vsel %vm201_vm6, %v194_v14, 920167782 }
  0x9b   :  { %v210_v23 = vsel %vm198_vm4, %v188_v12, %v191_v13  ;;  %vm199_vm7 = vcmp.lt.s32.totalorder %v179_v46, 2  ;;  %v204_v24 = vsel %vm200_vm5, %v188_v12, %v203_v20  ;;  %v208_v27 = vsel %vm200_vm5, %v191_v13, %v207_v22 }
  0x9c   :  { %v211_v28 = vsel %vm201_vm6, %v197_v18, 1326507024  ;;  %v104_v31 = vsel %vm98_vm3, %v91_v16, 920167782  ;;  %v108_v32 = vsel %vm98_vm3, %v94_v17, 1326507024  ;;  %v209_v33 = vsel %vm199_vm7, %v206_v21, %v208_v27 }
  0x9d   :  { %v212_v34 = vsel %vm200_vm5, %v194_v14, %v211_v28  ;;  %v205_v35 = vsel %vm199_vm7, %v202_v19, %v204_v24  ;;  %v1913_v37 = vmul.u32.u64.low %v1901_v45, %v209_v33  ;;  %v1914_v38 = vmul.u32.u64.high %v1901_v45, %v209_v33, %v1913_v37 }
  0x9e   :  { %v213_v36 = vsel %vm199_vm7, %v210_v23, %v212_v34  ;;  %v80_v41 = vshll.u32 %v1797_v53, %v77_v44  ;;  %v81_v42 = vshrl.u32 %v1798_v55, %v78_v48  ;;  %v83_v43 = vshll.u32 %v1798_v55, %v77_v44 }
  0x9f   :  { %v1917_v39 = vmul.u32.u64.low %v1901_v45, %v213_v36  ;;  %v1918_v40 = vmul.u32.u64.high %v1901_v45, %v213_v36, %v1917_v39  ;;  %v84_v46 = vshrl.u32 %v1801_v62, %v78_v48  ;;  %v86_v47 = vshll.u32 %v1801_v62, %v77_v44 }
  0xa0   :  { %v87_v52 = vshrl.u32 %v1796_v51, %v78_v48  ;;  %v221_v54 = vmul.u32 %v1901_v45, %v205_v35  ;;  %v79_v56 = vshrl.u32 %v1797_v53, %v78_v48  ;;  %v82_v57 = vor.u32 %v81_v42, %v80_v41 }
  0xa1   :  { %vm95_vm8 = vcmp.lt.s32.totalorder %v1905_v50, 1  ;;  %v224_v58 = vadd.s32 1, %v1914_v38  ;;  %v85_v59 = vor.u32 %v84_v46, %v83_v43  ;;  %vm97_vm9 = vcmp.lt.s32.totalorder %v1905_v50, 3 }
  0xa2   :  { %v88_v60 = vor.u32 %v87_v52, %v86_v47  ;;  %vm223_vm10 = vc.u32 %v1918_v40, %v1913_v37  ;;  %vm96_vm11 = vcmp.lt.s32.totalorder %v1905_v50, 2  ;;  %v99_v44 = vsel %vm95_vm8, %v79_v56, %v82_v57 }
  0xa3   :  { %v109_v51 = vsel %vm97_vm9, %v91_v16, %v108_v32  ;;  %v225_v45 = vsel %vm223_vm10, %v224_v58, %v1914_v38  ;;  %v103_v53 = vsel %vm95_vm8, %v82_v57, %v85_v59  ;;  %v222_v32 = vadd.s32 %v1913_v37, %v1918_v40 }
  0xa4   :  { %v100_v48 = vsel %vm98_vm3, %v88_v60, 2102212464  ;;  %v105_v55 = vsel %vm97_vm9, %v88_v60, %v104_v31  ;;  %v226_v61 = vadd.s32 %v225_v45, %v221_v54  ;;  %v107_v0 = vsel %vm95_vm8, %v85_v59, %v88_v60 }
  0xa5   :  { %v101_v62 = vsel %vm97_vm9, %v85_v59, %v100_v48  ;;  %v106_v63 = vsel %vm96_vm11, %v103_v53, %v105_v55  ;;  %v110_v1 = vsel %vm96_vm11, %v107_v0, %v109_v51  ;;  %vm64_vm3 = vcmp.le.f32.partialorder %v63_v30, 0.7853982 }
  0xa6   :  { %v1936_v2 = vmul.u32.u64.low %v1903_v49, %v106_v63  ;;  %v1937_v3 = vmul.u32.u64.high %v1903_v49, %v106_v63, %v1936_v2  ;;  %v227_v4 = vadd.s32 536870912, %v226_v61  ;;  %v102_v11 = vsel %vm96_vm11, %v99_v44, %v101_v62 }
  0xa7   :  { %v1940_v5 = vmul.u32.u64.low %v1903_v49, %v110_v1  ;;  %v1941_v10 = vmul.u32.u64.high %v1903_v49, %v110_v1, %v1940_v5  ;;  %v118_v15 = vmul.u32 %v1903_v49, %v102_v11  ;;  %vm258_vm10 = vweird.f32 %v1889_v25 }
  0xa8   :  { %v228_v12 = vshrl.u32 %v227_v4, 30  ;;  %v121_v13 = vadd.s32 1, %v1937_v3 }
  0xa9   :  { %vm120_vm12 = vc.u32 %v1941_v10, %v1936_v2  ;;  %v119_v56 = vadd.s32 %v1936_v2, %v1941_v10 }
  0xaa   :  { %v229_v14 = vshll.u32 %v228_v12, 30  ;;  %v122_v50 = vsel %vm120_vm12, %v121_v13, %v1937_v3  ;;  %v252_v51 = vsub.s32 4, %v228_v12 }
  0xab   :  { %v123_v17 = vadd.s32 %v122_v50, %v118_v15 }
  0xac   :  { %v230_v16 = vsub.s32 %v226_v61, %v229_v14  ;;  %v253_v62 = vsel %vm168_vm15, %v252_v51, %v228_v12  ;;  %v1516_v51 = vld [vmem:[%s2161_s4 + $0x30] sm:$0xff] }
  0xad   :  { %v124_v19 = vadd.s32 536870912, %v123_v17  ;;  %v255_v2 = vsel %vm167_vm1, 0, %v253_v62 }
  0xae   :  { %v232_v18 = vsub.s32 0, %v230_v16  ;;  %v466_v5 = vadd.s32 3, %v255_v2  ;;  %v259_v13 = vand.u32 3, %v255_v2 }
  0xaf   :  { %v125_v21 = vshrl.u32 %v124_v19, 30 }
  0xb0   :  { %v1491_v20 = vmin.u32 %v232_v18, %v230_v16  ;;  %v467_v12 = vand.u32 3, %v466_v5  ;;  %vm261_vm5 = vcmp.eq.s32.totalorder %v259_v13, 0  ;;  %vm264_vm6 = vcmp.eq.s32.totalorder %v259_v13, 2 }
  0xb1   :  { %v126_v23 = vshll.u32 %v125_v21, 30  ;;  %v149_v4 = vsub.s32 4, %v125_v21  ;;  %vm260_vm9 = vcmp.lt.s32.totalorder %v259_v13, 2 }
  0xb2   :  { %v234_v22 = vclz %v1491_v20  ;;  %vm472_vm4 = vcmp.eq.s32.totalorder %v467_v12, 2  ;;  %vm469_vm7 = vcmp.eq.s32.totalorder %v467_v12, 0  ;;  %vm468_vm8 = vcmp.lt.s32.totalorder %v467_v12, 2 }
  0xb3   :  { %v127_v27 = vsub.s32 %v123_v17, %v126_v23  ;;  %v150_v11 = vsel %vm65_vm2, %v149_v4, %v125_v21 }
  0xb4   :  { %v1492_v24 = vadd.s32 4294967294, %v234_v22  ;;  %v152_v15 = vsel %vm64_vm3, 0, %v150_v11 }
  0xb5   :  { %v129_v31 = vsub.s32 0, %v127_v27  ;;  %v362_v30 = vadd.s32 3, %v152_v15 }
  0xb6   :  { %vm1493_vm13 = vcmp.lt.s32.totalorder %v1492_v24, 0 }
  0xb7   :  { %v237_v28 = vsel %vm1493_vm13, 0, %v1492_v24  ;;  %v1487_v34 = vmin.u32 %v129_v31, %v127_v27  ;;  %v156_v31 = vand.u32 3, %v152_v15 }
  0xb8   :  { %v238_v49 = vsub.s32 32, %v237_v28  ;;  %v242_v33 = vsub.s32 4294967266, %v237_v28  ;;  %v239_v35 = vshll.u32 %v230_v16, %v237_v28  ;;  %v363_v28 = vand.u32 3, %v362_v30 }
  0xb9   :  { %v131_v39 = vclz %v1487_v34  ;;  %vm161_vm12 = vcmp.eq.s32.totalorder %v156_v31, 2  ;;  %v1802_v30 = vmov 2  }
  0xba   :  { %v240_v36 = vshrl.u32 %v222_v32, %v238_v49  ;;  %v243_v38 = vadd.s32 127, %v242_v33  ;;  %vm368_vm11 = vcmp.eq.s32.totalorder %v363_v28, 2  ;;  %vm365_vm13 = vcmp.eq.s32.totalorder %v363_v28, 0  ;;  %1753 = vset.pattern.permute.xlu1 %v1802_v30  ;;  %1754 = vset.pattern.permute.xlu0 %v1802_v30 }
  0xbb   :  { %v1488_v43 = vadd.s32 4294967294, %v131_v39  ;;  %951 = vperm.xlu1 %1753, %v1861_v6   ;;  %947 = vperm.xlu0 %1754, %v1867_v7  }
  0xbc   :  { %v241_v41 = vor.u32 %v240_v36, %v239_v35  ;;  %v244_v42 = vshll.u32 %v243_v38, 23 }
  0xbd   :  { %vm1489_vm14 = vcmp.lt.s32.totalorder %v1488_v43, 0 }
  0xbe   :  { %v245_v46 = vor.u32 4788187, %v244_v42  ;;  %v248_v52 = vcvt.s32.f32 %v241_v41  ;;  %v134_v54 = vsel %vm1489_vm14, 0, %v1488_v43  ;;  %vm158_vm14 = vcmp.eq.s32.totalorder %v156_v31, 0 }
  0xbf   :  { %v135_v57 = vsub.s32 32, %v134_v54  ;;  %v139_v58 = vsub.s32 4294967266, %v134_v54  ;;  %v136_v40 = vshll.u32 %v127_v27, %v134_v54  ;;  %v1505_v54 = vld [vmem:[%s2160_s3 + $0x38] sm:$0xff]  ;;  %943 = vperm.xlu1 %1753, %v1872_v8  }
  0xc0   :  { %v246_v47 = vand.u32 2147483647, %v245_v46  ;;  %v1503_v46 = vld [vmem:[%s2160_s3 + $0x28] sm:$0xff] }
  0xc1   :  { %v137_v59 = vshrl.u32 %v119_v56, %v135_v57  ;;  %v140_v60 = vadd.s32 127, %v139_v58  ;;  %v480_v56 = vld [vmem:[%s2160_s3 + $0x18] sm:$0xff]  ;;  %v27_v58 = vld [vmem:[%s2158_s1 + $0x10] sm:$0xff] }
  0xc2   :  { %v249_v37 = vmul.f32 %v248_v52, %v246_v47  ;;  %v478_v47 = vld [vmem:[%s2160_s3 + $0x8] sm:$0xff]  ;;  %v1504_v52 = vld [vmem:[%s2160_s3 + $0x30] sm:$0xff]  ;;  %v28_v57 = vld [vmem:[%s2158_s1 + $0x18] sm:$0xff] }
  0xc3   :  { %v138_v45 = vor.u32 %v137_v59, %v136_v40  ;;  %v141_v48 = vshll.u32 %v140_v60, 23  ;;  %v25_v40 = vld [vmem:[%s2158_s1] sm:$0xff]  ;;  %v1515_v60 = vld [vmem:[%s2161_s4 + $0x28] sm:$0xff]  ;;  %939 = vperm.xlu1 %1753, %v1879_v9  }
  0xc4   :  { %v250_v44 = vxor.u32 2147483648, %v249_v37  ;;  %v1514_v59 = vld [vmem:[%s2161_s4 + $0x20] sm:$0xff] }
  0xc5   :  { %v142_v61 = vor.u32 4788187, %v141_v48  ;;  %v145_v0 = vcvt.s32.f32 %v138_v45  ;;  %v1517_v45 = vld [vmem:[%s2161_s4 + $0x38] sm:$0xff]  ;;  %v703_v48 = vpop.permute.xlu1 %702 }
  0xc6   :  { %v251_v53 = vsel %vm168_vm15, %v250_v44, %v249_v37  ;;  %vm364_vm15 = vcmp.lt.s32.totalorder %v363_v28, 2  ;;  %v26_v37 = vld [vmem:[%s2158_s1 + $0x8] sm:$0xff]  ;;  %v709_v44 = vld [vmem:[%s2161_s4] sm:$0xff] }
  0xc7   :  { %v254_v55 = vsel %vm167_vm1, %v1889_v25, %v251_v53  ;;  %v143_v63 = vand.u32 2147483647, %v142_v61  ;;  %vm157_vm1 = vcmp.lt.s32.totalorder %v156_v31, 2 }
  0xc8   :  { %1764 = vcosq.f32 %v254_v55 }
  0xc9   :  { %1766 = vsinq.f32 %v254_v55  ;;  %v146_v1 = vmul.f32 %v145_v0, %v143_v63  ;;  %v693_v63 = vpop.permute.xlu1 %692 }
  0xcb   :  { %v147_v3 = vxor.u32 2147483648, %v146_v1 }
  0xcd   :  { %v148_v29 = vsel %vm65_vm2, %v147_v3, %v146_v1  ;;  %vm155_vm2 = vweird.f32 %v1891_v26  ;;  %v698_v3 = vpop.permute.xlu0 %697 }
  0xce   :  { %v151_v10 = vsel %vm64_vm3, %v1891_v26, %v148_v29  ;;  %v479_v26 = vld [vmem:[%s2160_s3 + $0x10] sm:$0xff]  ;;  %vm1450_vm3 = vcmask 64512  }
  0xcf   :  { %1768 = vcosq.f32 %v151_v10 }
  0xd0   :  { %1770 = vsinq.f32 %v151_v10 }
  0xd1   :  { %v927_v28 = vpop.permute.xlu0 %926 }
  0xd5   :  { %v1765_v14 = vpop.eup %1764 }
  0xd6   :  { %v1767_v50 = vpop.eup %1766  ;;  %v265_v16 = vxor.u32 2147483648, %v1765_v14 }
  0xd7   :  { %v262_v17 = vxor.u32 2147483648, %v1767_v50 }
  0xd8   :  { %v474_v18 = vsel %vm472_vm4, %v265_v16, %v1767_v50  ;;  %v266_v19 = vsel %vm264_vm6, %v265_v16, %v1767_v50  ;;  %v710_v16 = vld [vmem:[%s2161_s4 + $0x8] sm:$0xff]  ;;  %vm1470_vm4 = vcmask 57344  }
  0xd9   :  { %v471_v20 = vsel %vm469_vm7, %v1765_v14, %v262_v17  ;;  %v263_v22 = vsel %vm261_vm5, %v1765_v14, %v262_v17  ;;  %v688_v14 = vpop.permute.xlu1 %687  ;;  %v711_v17 = vld [vmem:[%s2161_s4 + $0x10] sm:$0xff] }
  0xda   :  { %v475_v21 = vsel %vm468_vm8, %v471_v20, %v474_v18  ;;  %v267_v23 = vsel %vm260_vm9, %v263_v22, %v266_v19  ;;  %v712_v18 = vld [vmem:[%s2161_s4 + $0x18] sm:$0xff]  ;;  %v1526_v19 = vld [vmem:[%s2161_s4 + $0x40] sm:$0xff] }
  0xdb   :  { %v476_v24 = vsel %vm258_vm10, nan, %v475_v21  ;;  %v268_v27 = vsel %vm258_vm10, nan, %v267_v23 }
  0xdc   :  { %1618 = vmatprep.subr.mxu0 %v476_v24  ;;  %1628 = vmatprep.subr.mxu1 %v268_v27  ;;  %v1769_v32 = vpop.eup %1768 }
  0xdd   :  { %1619 = vmatpush3.msra.mxu0 %v476_v24  ;;  %1629 = vmatpush3.msra.mxu1 %v268_v27  ;;  %v1771_v49 = vpop.eup %1770  ;;  %v162_v33 = vxor.u32 2147483648, %v1769_v32  ;;  %v923_v23 = vpop.permute.xlu1 %922 }
  0xde   :  { %v159_v34 = vxor.u32 2147483648, %v1771_v49 }
  0xdf   :  { %v370_v35 = vsel %vm368_vm11, %v162_v33, %v1771_v49  ;;  %v163_v25 = vsel %vm161_vm12, %v162_v33, %v1771_v49 }
  0xe0   :  { %v367_v36 = vsel %vm365_vm13, %v1769_v32, %v159_v34  ;;  %v160_v38 = vsel %vm158_vm14, %v1769_v32, %v159_v34 }
  0xe1   :  { %v371_v39 = vsel %vm364_vm15, %v367_v36, %v370_v35  ;;  %v164_v41 = vsel %vm157_vm1, %v160_v38, %v163_v25  ;;  %v919_v36 = vpop.permute.xlu1 %918 }
  0xe2   :  { %v372_v42 = vsel %vm155_vm2, nan, %v371_v39  ;;  %v165_v43 = vsel %vm155_vm2, nan, %v164_v41  ;;  %v915_v41 = vpop.permute.xlu0 %914 }
  0xe3   :  { %1620 = vmatprep.subr.mxu0 %v372_v42  ;;  %1630 = vmatprep.subr.mxu1 %v165_v43 }
  0xe4   :  { %1621 = vmatpush3.msra.mxu0 %v372_v42  ;;  %1631 = vmatpush3.msra.mxu1 %v165_v43 }
  0xe5   :  { %1623 = vmatmul.mubr.msk.f32.vlgmr.msra.gmra.mxu0 %vm486_vm0, %v1503_v46  ;;  %1633 = vmatmul.mubr.msk.f32.vlgmr.msra.gmra.mxu1 %vm486_vm0, %v478_v47  ;;  %v1527_v46 = vld [vmem:[%s2161_s4 + $0x48] sm:$0xff]  ;;  %v1528_v47 = vld [vmem:[%s2161_s4 + $0x50] sm:$0xff] }
  0xe6   :  { %1625 = vmatprep.mubr.msk.f32.mxu0 %vm486_vm0, %v1504_v52  ;;  %1635 = vmatprep.mubr.msk.f32.mxu1 %vm486_vm0, %v479_v26  ;;  %v1529_v52 = vld [vmem:[%s2161_s4 + $0x58] sm:$0xff]  ;;  %v1534_v26 = vld [vmem:[%s2161_s4 + $0x80] sm:$0xff] }
  0xe7   :  { %1638 = vmatprep.subr.mxu0 %v28_v57 }
  0xe8   :  { %1639 = vmatpush3.msra.mxu0 %v28_v57 }
  0xe9   :  { %1626 = vmatmul.mubr.msk.f32.gmra.mxu0 %vm486_vm0, %v1505_v54  ;;  %1636 = vmatmul.mubr.msk.f32.gmra.mxu1 %vm486_vm0, %v480_v56  ;;  %vm718_vm0 = vcmask 261120   ;;  %v1803_v54 = vmov 4  }
  0xea   :  { %1640 = vmatprep.subr.mxu0 %v27_v58  ;;  %1646 = vmatprep.mubr.msk.f32.mxu0 %vm718_vm0, %v1514_v59 }
  0xeb   :  { %1641 = vmatpush3.msra.mxu0 %v27_v58  ;;  %1660 = vmatprep.mubr.msk.f32.mxu1 %vm718_vm0, %v709_v44 }
  0xec   :  { %1642 = vmatprep.subr.mxu0 %v26_v37  ;;  %1756 = vset.pattern.permute.xlu1 %v1803_v54 }
  0xed   :  { %1643 = vmatpush3.msra.mxu0 %v26_v37  ;;  %1755 = vset.pattern.permute.xlu0 %v1803_v54 }
  0xee   :  { %1644 = vmatprep.subr.mxu0 %v25_v40  ;;  %1069 = vperm.xlu1 %1756, %v1867_v7  }
  0xef   :  { %1645 = vmatpush3.msra.mxu0 %v25_v40  ;;  %1073 = vperm.xlu0 %1755, %v1861_v6  }
  0xf0   :  { %1647 = vmatmul.mubr.msk.f32.vlgmr.msra.gmra.mxu0 %vm718_vm0, %v1515_v60 }
  0xf1   :  { %1649 = vmatprep.mubr.msk.f32.mxu0 %vm718_vm0, %v1516_v51 }
  0xf2   :  { %1065 = vperm.xlu1 %1756, %v1872_v8  }
  0xf3   :  { %1061 = vperm.xlu0 %1755, %v1879_v9  }
  0xf4   :  { %1650 = vmatmul.mubr.msk.f32.gmra.mxu0 %vm718_vm0, %v1517_v45 }
  0xf5   :  { %1674 = vmatprep.mubr.msk.f32.mxu0 %vm718_vm0, %v1526_v19 }
 0x136   :  { %v952_v56 = vpop.permute.xlu1 %951  ;;  %v948_v59 = vpop.permute.xlu0 %947 }
 0x13a   :  { %v944_v57 = vpop.permute.xlu1 %943 }
 0x13e   :  { %v940_v44 = vpop.permute.xlu1 %939 }
 0x1a5   :  { %v1624_v53 = vpop.f32.mrf.mxu0  ;;  %v1634_v55 = vpop.f32.mrf.mxu1 }
 0x1a6   :  { %v668_v29 = vadd.f32 %v1634_v55, %v1624_v53 }
 0x1a7   :  { %v565_v61 = vpop.f32.mrf.mxu0  ;;  %v662_v62 = vpop.f32.mrf.mxu1 }
 0x1a8   :  { %v663_v12 = vadd.f32 %v662_v62, %v565_v61  ;;  %v706_v15 = vadd.f32 %v693_v63, %v668_v29  ;;  %v1074_v29 = vpop.permute.xlu0 %1073 }
 0x1a9   :  { %v1627_v0 = vpop.f32.mrf.mxu0  ;;  %v1637_v1 = vpop.f32.mrf.mxu1 }
 0x1aa   :  { %v678_v2 = vadd.f32 %v1637_v1, %v1627_v0  ;;  %v705_v50 = vadd.f32 %v688_v14, %v663_v12  ;;  %v1535_v0 = vld [vmem:[%s2161_s4 + $0x88] sm:$0xff]  ;;  %v1536_v1 = vld [vmem:[%s2161_s4 + $0x90] sm:$0xff] }
 0x1ab   :  { %v575_v4 = vpop.f32.mrf.mxu0  ;;  %v672_v5 = vpop.f32.mrf.mxu1 }
 0x1ac   :  { %v708_v10 = vadd.f32 %v703_v48, %v678_v2  ;;  %v673_v11 = vadd.f32 %v672_v5, %v575_v4  ;;  %v1537_v2 = vld [vmem:[%s2161_s4 + $0x98] sm:$0xff]  ;;  %v1804_v4 = vmov 3   ;;  %v1070_v5 = vpop.permute.xlu1 %1069 }
 0x1ad   :  { %1757 = vset.pattern.permute.xlu1 %v1804_v4  ;;  %1758 = vset.pattern.permute.xlu0 %v1804_v4 }
 0x1ae   :  { %v707_v13 = vadd.f32 %v698_v3, %v673_v11  ;;  %1652 = vmatprep.subr.mxu1 %v708_v10  ;;  %v1542_v3 = vld [vmem:[%s2161_s4 + $0x60] sm:$0xff]  ;;  %1199 = vperm.xlu1 %1757, %v1861_v6  }
 0x1af   :  { %1653 = vmatpush3.msra.mxu1 %v708_v10  ;;  %1195 = vperm.xlu0 %1758, %v1867_v7  }
 0x1b0   :  { %1654 = vmatprep.subr.mxu1 %v707_v13  ;;  %v1648_v20 = vpop.f32.mrf.mxu0  ;;  %v1066_v11 = vpop.permute.xlu1 %1065 }
 0x1b1   :  { %1655 = vmatpush3.msra.mxu1 %v707_v13  ;;  %v1062_v13 = vpop.permute.xlu0 %1061 }
 0x1b2   :  { %1656 = vmatprep.subr.mxu1 %v706_v15  ;;  %v797_v22 = vpop.f32.mrf.mxu0  ;;  %1191 = vperm.xlu1 %1757, %v1872_v8  }
 0x1b3   :  { %1657 = vmatpush3.msra.mxu1 %v706_v15 }
 0x1b4   :  { %1658 = vmatprep.subr.mxu1 %v705_v50  ;;  %v1651_v24 = vpop.f32.mrf.mxu0 }
 0x1b5   :  { %1659 = vmatpush3.msra.mxu1 %v705_v50 }
 0x1b6   :  { %1661 = vmatmul.mubr.msk.f32.vlgmr.msra.gmra.mxu1 %vm718_vm0, %v710_v16  ;;  %v807_v49 = vpop.f32.mrf.mxu0  ;;  %1187 = vperm.xlu1 %1757, %v1879_v9  }
 0x1b7   :  { %1663 = vmatprep.mubr.msk.f32.mxu1 %vm718_vm0, %v711_v17 }
 0x1ba   :  { %1664 = vmatmul.mubr.msk.f32.gmra.mxu1 %vm718_vm0, %v712_v18 }
 0x1bb   :  { %1688 = vmatprep.mubr.msk.f32.mxu1 %vm718_vm0, %v1534_v26 }
 0x276   :  { %v1662_v21 = vpop.f32.mrf.mxu1 }
 0x277   :  { %v900_v34 = vadd.f32 %v1662_v21, %v1648_v20 }
 0x278   :  { %v894_v27 = vpop.f32.mrf.mxu1 }
 0x279   :  { %v895_v38 = vadd.f32 %v894_v27, %v797_v22  ;;  %v2041_v42 = vadd.f32 %v919_v36, %v900_v34  ;;  %v1806_v34 = vmov 6   ;;  %v1200_v36 = vpop.permute.xlu1 %1199 }
 0x27a   :  { %v1665_v31 = vpop.f32.mrf.mxu1 }
 0x27b   :  { %v910_v32 = vadd.f32 %v1665_v31, %v1651_v24  ;;  %v2045_v43 = vadd.f32 %v915_v41, %v895_v38  ;;  %v1544_v31 = vld [vmem:[%s2161_s4 + $0x70] sm:$0xff] }
 0x27c   :  { %v904_v33 = vpop.f32.mrf.mxu1 }
 0x27d   :  { %v2035_v35 = vadd.f32 %v927_v28, %v910_v32  ;;  %v905_v25 = vadd.f32 %v904_v33, %v807_v49  ;;  %v1543_v28 = vld [vmem:[%s2161_s4 + $0x68] sm:$0xff]  ;;  %v1545_v32 = vld [vmem:[%s2161_s4 + $0x78] sm:$0xff]  ;;  %v1550_v49 = vld [vmem:[%s2161_s4 + $0xa0] sm:$0xff]  ;;  %v1805_v33 = vmov 5   ;;  %v1192_v38 = vpop.permute.xlu1 %1191 }
 0x27e   :  { %1760 = vset.pattern.permute.xlu1 %v1805_v33  ;;  %1759 = vset.pattern.permute.xlu0 %v1805_v33 }
 0x27f   :  { %v2037_v39 = vadd.f32 %v923_v23, %v905_v25  ;;  %1666 = vmatprep.subr.mxu0 %v2035_v35  ;;  %1313 = vperm.xlu1 %1760, %v1872_v8   ;;  %v1807_v25 = vmov 7  }
 0x280   :  { %1667 = vmatpush3.msra.mxu0 %v2035_v35  ;;  %1309 = vperm.xlu0 %1759, %v1879_v9  }
 0x281   :  { %1668 = vmatprep.subr.mxu0 %v2037_v39 }
 0x282   :  { %1669 = vmatpush3.msra.mxu0 %v2037_v39 }
 0x283   :  { %1670 = vmatprep.subr.mxu0 %v2041_v42  ;;  %1317 = vperm.xlu1 %1760, %v1867_v7  }
 0x284   :  { %1671 = vmatpush3.msra.mxu0 %v2041_v42  ;;  %1321 = vperm.xlu0 %1759, %v1861_v6  }
 0x285   :  { %1672 = vmatprep.subr.mxu0 %v2045_v43 }
 0x286   :  { %1673 = vmatpush3.msra.mxu0 %v2045_v43 }
 0x287   :  { %1675 = vmatmul.mubr.msk.f32.vlgmr.msra.gmra.mxu0 %vm718_vm0, %v1527_v46  ;;  %1761 = vset.pattern.permute.xlu1 %v1806_v34  ;;  %v1188_v46 = vpop.permute.xlu1 %1187 }
 0x288   :  { %1677 = vmatprep.mubr.msk.f32.mxu0 %vm718_vm0, %v1528_v47  ;;  %1762 = vset.pattern.permute.xlu0 %v1806_v34 }
 0x289   :  { %1431 = vperm.xlu1 %1761, %v1879_v9   ;;  %1435 = vperm.xlu0 %1762, %v1872_v8  }
 0x28b   :  { %1678 = vmatmul.mubr.msk.f32.gmra.mxu0 %vm718_vm0, %v1529_v52 }
 0x28c   :  { %1702 = vmatprep.mubr.msk.f32.mxu0 %vm718_vm0, %v1542_v3 }
 0x28d   :  { %1439 = vperm.xlu1 %1761, %v1867_v7   ;;  %1763 = vset.pattern.permute.xlu0 %v1807_v25 }
 0x291   :  { %1443 = vperm.xlu1 %1761, %v1861_v6  }
 0x347   :  { %v1676_v58 = vpop.f32.mrf.mxu0 }
 0x348   :  { %v1038_v45 = vadd.f32 %v1676_v58, %v944_v57  ;;  %v1551_v57 = vld [vmem:[%s2161_s4 + $0xa8] sm:$0xff]  ;;  %v1552_v58 = vld [vmem:[%s2161_s4 + $0xb0] sm:$0xff] }
 0x349   :  { %v1032_v37 = vpop.f32.mrf.mxu0 }
 0x34a   :  { %v1033_v55 = vadd.f32 %v1032_v37, %v940_v44  ;;  %v1052_v62 = vmax.f32 %v1038_v45, 0.0  ;;  %v1553_v37 = vld [vmem:[%s2161_s4 + $0xb8] sm:$0xff]  ;;  %s1808_s4 = smov [#allocation2]  }
 0x34b   :  { %v1679_v40 = vpop.f32.mrf.mxu0  ;;  %s1478_s26 = sshll.u32 %s1808_s4, 4  ;;  %s1479_s26 = int_to_ptr.vmem [resolvable:$true] %s1478_s26 }
 0x34c   :  { %v1048_v60 = vadd.f32 %v1679_v40, %v952_v56  ;;  %v1051_v63 = vmax.f32 %v1033_v55, 0.0  ;;  %v1314_v40 = vpop.permute.xlu1 %1313  ;;  %s1772_s27 = scalar_lea.vmem %s1479_s26, 16  ;;  %s1776_s2 = scalar_lea.vmem %s1479_s26, 32 }
 0x34d   :  { %v1042_v51 = vpop.f32.mrf.mxu0  ;;  %p1773_p0 = scmp.ne.s32.totalorder %s1479_s26, %s1772_s27  ;;  %p1777_p1 = scmp.lt.s32.totalorder %s1479_s26, %s1479_s26 }
 0x34e   :  { %v1054_v48 = vmax.f32 %v1048_v60, 0.0  ;;  %v1043_v53 = vadd.f32 %v1042_v51, %v948_v59  ;;  %p1778_p2 = scmp.lt.s32.totalorder %s1776_s2, %s1772_s27 }
 0x350   :  { %v1053_v61 = vmax.f32 %v1043_v53, 0.0  ;;  %1680 = vmatprep.subr.mxu1 %v1054_v48  ;;  %v1318_v59 = vpop.permute.xlu1 %1317  ;;  %p1779_p3 = por %p1778_p2, %p1777_p1 }
 0x351   :  { %1681 = vmatpush3.msra.mxu1 %v1054_v48 }
 0x352   :  { %1682 = vmatprep.subr.mxu1 %v1053_v61  ;;  %p1780_p4 = pnand %p1779_p3, %p1773_p0 }
 0x353   :  { %1683 = vmatpush3.msra.mxu1 %v1053_v61 }
 0x354   :  { %1684 = vmatprep.subr.mxu1 %v1052_v62  ;;  %v1432_v44 = vpop.permute.xlu1 %1431 }
 0x355   :  { %1685 = vmatpush3.msra.mxu1 %v1052_v62 }
 0x356   :  { %1686 = vmatprep.subr.mxu1 %v1051_v63 }
 0x357   :  { %1687 = vmatpush3.msra.mxu1 %v1051_v63 }
 0x358   :  { %1689 = vmatmul.mubr.msk.f32.vlgmr.msra.gmra.mxu1 %vm718_vm0, %v1535_v0  ;;  %v1440_v0 = vpop.permute.xlu1 %1439 }
 0x359   :  { %1691 = vmatprep.mubr.msk.f32.mxu1 %vm718_vm0, %v1536_v1 }
 0x35c   :  { %1692 = vmatmul.mubr.msk.f32.gmra.mxu1 %vm718_vm0, %v1537_v2 }
 0x35d   :  { %1716 = vmatprep.mubr.msk.f32.mxu1 %vm718_vm0, %v1550_v49 }
 0x418   :  { %v1690_v10 = vpop.f32.mrf.mxu1 }
 0x419   :  { %v1160_v15 = vadd.f32 %v1690_v10, %v1066_v11 }
 0x41a   :  { %v1154_v12 = vpop.f32.mrf.mxu1 }
 0x41b   :  { %v1155_v17 = vadd.f32 %v1154_v12, %v1062_v13  ;;  %v1174_v30 = vmax.f32 %v1160_v15, 0.0 }
 0x41c   :  { %v1693_v14 = vpop.f32.mrf.mxu1 }
 0x41d   :  { %v1170_v50 = vadd.f32 %v1693_v14, %v1074_v29  ;;  %v1173_v21 = vmax.f32 %v1155_v17, 0.0  ;;  %v2100_v24 = vadd.f32 %v1174_v30, %v2041_v42 }
 0x41e   :  { %v1164_v16 = vpop.f32.mrf.mxu1 }
 0x41f   :  { %v1176_v18 = vmax.f32 %v1170_v50, 0.0  ;;  %v1165_v19 = vadd.f32 %v1164_v16, %v1070_v5  ;;  %v2105_v27 = vadd.f32 %v1173_v21, %v2045_v43  ;;  %v1196_v43 = vpop.permute.xlu0 %1195  ;;  %v1444_v16 = vpop.permute.xlu1 %1443 }
 0x421   :  { %v2092_v20 = vadd.f32 %v1176_v18, %v2035_v35  ;;  %v1175_v22 = vmax.f32 %v1165_v19, 0.0  ;;  %v1429_v35 = vld [vmem:[%s2162_s5] sm:$0x1] }
 0x422   :  { %1466 = vperm.xlu0 %1763, %v1429_v35  }
 0x423   :  { %v2095_v23 = vadd.f32 %v1175_v22, %v2037_v39  ;;  %1694 = vmatprep.subr.mxu0 %v2092_v20  ;;  %v1310_v60 = vpop.permute.xlu0 %1309 }
 0x424   :  { %1695 = vmatpush3.msra.mxu0 %v2092_v20 }
 0x425   :  { %1696 = vmatprep.subr.mxu0 %v2095_v23 }
 0x426   :  { %1697 = vmatpush3.msra.mxu0 %v2095_v23 }
 0x427   :  { %1698 = vmatprep.subr.mxu0 %v2100_v24  ;;  %v1322_v45 = vpop.permute.xlu0 %1321 }
 0x428   :  { %1699 = vmatpush3.msra.mxu0 %v2100_v24 }
 0x429   :  { %1700 = vmatprep.subr.mxu0 %v2105_v27 }
 0x42a   :  { %1701 = vmatpush3.msra.mxu0 %v2105_v27 }
 0x42b   :  { %1703 = vmatmul.mubr.msk.f32.vlgmr.msra.gmra.mxu0 %vm718_vm0, %v1543_v28  ;;  %v1436_v3 = vpop.permute.xlu0 %1435 }
 0x42c   :  { %1705 = vmatprep.mubr.msk.f32.mxu0 %vm718_vm0, %v1544_v31 }
 0x42f   :  { %1706 = vmatmul.mubr.msk.f32.gmra.mxu0 %vm718_vm0, %v1545_v32 }
 0x49d   :  { %v1467_v34 = vpop.permute.xlu0 %1466 }
 0x4eb   :  { %v1704_v39 = vpop.f32.mrf.mxu0 }
 0x4ec   :  { %v1286_v47 = vadd.f32 %v1704_v39, %v1192_v38 }
 0x4ed   :  { %v1280_v41 = vpop.f32.mrf.mxu0 }
 0x4ee   :  { %v1281_v54 = vadd.f32 %v1280_v41, %v1188_v46  ;;  %v1300_v7 = vmax.f32 %v1286_v47, 0.0 }
 0x4ef   :  { %v1707_v42 = vpop.f32.mrf.mxu0 }
 0x4f0   :  { %v1296_v9 = vadd.f32 %v1707_v42, %v1200_v36  ;;  %v1299_v6 = vmax.f32 %v1281_v54, 0.0 }
 0x4f1   :  { %v1290_v8 = vpop.f32.mrf.mxu0 }
 0x4f2   :  { %v1302_v52 = vmax.f32 %v1296_v9, 0.0  ;;  %v1291_v26 = vadd.f32 %v1290_v8, %v1196_v43 }
 0x4f4   :  { %v1301_v56 = vmax.f32 %v1291_v26, 0.0  ;;  %1708 = vmatprep.subr.mxu1 %v1302_v52 }
 0x4f5   :  { %1709 = vmatpush3.msra.mxu1 %v1302_v52 }
 0x4f6   :  { %1710 = vmatprep.subr.mxu1 %v1301_v56 }
 0x4f7   :  { %1711 = vmatpush3.msra.mxu1 %v1301_v56 }
 0x4f8   :  { %1712 = vmatprep.subr.mxu1 %v1300_v7 }
 0x4f9   :  { %1713 = vmatpush3.msra.mxu1 %v1300_v7 }
 0x4fa   :  { %1714 = vmatprep.subr.mxu1 %v1299_v6 }
 0x4fb   :  { %1715 = vmatpush3.msra.mxu1 %v1299_v6 }
 0x4fc   :  { %1717 = vmatmul.mubr.msk.f32.vlgmr.msra.gmra.mxu1 %vm718_vm0, %v1551_v57 }
 0x4fd   :  { %1719 = vmatprep.mubr.msk.f32.mxu1 %vm718_vm0, %v1552_v58 }
 0x500   :  { %1720 = vmatmul.mubr.msk.f32.gmra.mxu1 %vm718_vm0, %v1553_v37 }
 0x5bc   :  { %v1718_v51 = vpop.f32.mrf.mxu1 }
 0x5bd   :  { %v1408_v48 = vadd.f32 %v1718_v51, %v1314_v40 }
 0x5be   :  { %v1402_v53 = vpop.f32.mrf.mxu1 }
 0x5bf   :  { %v1422_v55 = vmax.f32 %v1408_v48, 0.0  ;;  %v1403_v61 = vadd.f32 %v1402_v53, %v1310_v60 }
 0x5c0   :  { %v1721_v62 = vpop.f32.mrf.mxu1 }
 0x5c1   :  { %v1421_v63 = vmax.f32 %v1403_v61, 0.0  ;;  %v1418_v1 = vadd.f32 %v1721_v62, %v1322_v45  ;;  %v1426_v2 = vadd.f32 %v1422_v55, %v2100_v24 }
 0x5c2   :  { %v1412_v4 = vpop.f32.mrf.mxu1 }
 0x5c3   :  { %v1425_v5 = vadd.f32 %v1421_v63, %v2105_v27  ;;  %v1424_v29 = vmax.f32 %v1418_v1, 0.0  ;;  %v1413_v10 = vadd.f32 %v1412_v4, %v1318_v59  ;;  %v1447_v12 = vmul.f32 %v1436_v3, %v1426_v2 }
 0x5c5   :  { %v1446_v11 = vmul.f32 %v1432_v44, %v1425_v5  ;;  %v1423_v13 = vmax.f32 %v1413_v10, 0.0  ;;  %v1428_v14 = vadd.f32 %v1424_v29, %v2092_v20  ;;  %v1452_v17 = vsel %vm1450_vm3, %v1447_v12, 0.0 }
 0x5c7   :  { %v1451_v15 = vsel %vm1450_vm3, %v1446_v11, 0.0  ;;  %v1427_v50 = vadd.f32 %v1423_v13, %v2095_v23  ;;  %v1449_v19 = vmul.f32 %v1444_v16, %v1428_v14 }
 0x5c8   :  { %v1453_v30 = vadd.f32 %v1452_v17, %v1451_v15 }
 0x5c9   :  { %v1448_v18 = vmul.f32 %v1440_v0, %v1427_v50  ;;  %v1456_v24 = vsel %vm1450_vm3, %v1449_v19, 0.0 }
 0x5cb   :  { %v1454_v22 = vsel %vm1450_vm3, %v1448_v18, 0.0 }
 0x5cc   :  { %v1455_v21 = vadd.f32 %v1454_v22, %v1453_v30 }
 0x5ce   :  { %v1457_v27 = vadd.f32 %v1456_v24, %v1455_v21 }
 0x5d0   :  { %v1458_v28 = vrot.slane %v1457_v27, 4 }
 0x5d2   :  { %v1459_v31 = vadd.f32 %v1458_v28, %v1457_v27 }
 0x5d4   :  { %v1460_v32 = vrot.slane %v1459_v31, 2 }
 0x5d6   :  { %v1461_v49 = vadd.f32 %v1460_v32, %v1459_v31 }
 0x5d8   :  { %v1462_v33 = vrot.slane %v1461_v49, 1 }
 0x5da   :  { %v1463_v20 = vadd.f32 %v1462_v33, %v1461_v49 }
 0x5dc   :  { %v1469_v23 = vadd.f32 %v1467_v34, %v1463_v20 }
 0x5de   :  { %1471 = vst.msk [vmem:[#allocation2] sm:$0x1] %vm1470_vm4, %v1469_v23 }
 0x5df   :  { %1783 = shalt.err (!%p1780_p4)
}
 0x5e0   :  { %1481 = dma.vmem_to_hbm [thread:$0]  %s1479_s26, 16, %s2163_s6, [#allocation3]  }
 0x5e1   :  { %1792 = dma.done.wait [#allocation3], 16  }
 0x5e2   :  { %1793 = vsyncadd [#allocation3], 4294967280 }
 0x5e3   :  { %1485 = vsyncpa [#allocation3], 1 }

</bundles_post_ra>
